<compile_context>
chip_gen: v6e
topology: v6e:2x2x1
jax: 0.10.0
libtpu: 0.0.40
codegen_flags: <defaults>
</compile_context>

<pallas_src>
import math

import jax
import jax.numpy as jnp
from jax.experimental import pallas as pl
from jax.experimental.pallas import tpu as pltpu

_MIB = 1024 * 1024


def _add_const_kernel(a_ref, x_ref, o_ref):
    # a_ref: (1,) scalar in SMEM; x_ref / o_ref: (tr, lane) VMEM tiles.
    o_ref[...] = x_ref[...] + a_ref[0].astype(x_ref.dtype)


def _tpu_config():
    """(num_tensorcores_per_chip, target_block_bytes) for the current backend."""
    try:
        kind = jax.devices()[0].device_kind.lower()
    except Exception:
        kind = ""
    num_tc = 2 if "v7" in kind else 1  # v7x has 2 TensorCores per chip
    # v5e (~0.8 TB/s): 2 MiB blocks already amortize the ~0.35 us/step grid
    # overhead and stay under its small default scoped VMEM. Newer chips: 4 MiB.
    old_gen = ("v5" in kind) or ("v4" in kind) or ("v3" in kind)
    block_bytes = 2 * _MIB if old_gen else 4 * _MIB
    return num_tc, block_bytes


def _pick_row_tile(rows, lane, itemsize, num_tc, block_bytes):
    """Byte-capped row tile, rounded to the dtype's sublane packing multiple."""
    # Sub-32-bit dtypes pack 2/4 rows per sublane -> min 16/32-row tiles.
    sublane_mult = max(8, 32 // max(1, itemsize))
    if rows <= sublane_mult:
        return rows  # block dim equals full array dim -> allowed
    bytes_per_row = lane * itemsize
    tr = (block_bytes // bytes_per_row) // sublane_mult * sublane_mult
    tr = max(sublane_mult, tr)
    if tr >= rows:
        tr = rows  # single grid step: no pointless split on 1-TC chips
    if num_tc == 2 and rows * bytes_per_row > 4 * _MIB:
        # v7x: shard across both TensorCores -> aim for an even step count.
        steps = max(2, math.ceil(rows / tr))
        if steps % 2:
            steps += 1
        tr = math.ceil(math.ceil(rows / steps) / sublane_mult) * sublane_mult
        tr = min(tr, rows)
    return tr


def _add_const_2d(x2, a_arr, dtype, num_tc, block_bytes):
    rows, lane = x2.shape
    itemsize = jnp.dtype(dtype).itemsize
    tr = _pick_row_tile(rows, lane, itemsize, num_tc, block_bytes)
    grid = (pl.cdiv(rows, tr),)
    return pl.pallas_call(
        _add_const_kernel,
        out_shape=jax.ShapeDtypeStruct((rows, lane), dtype),
        grid_spec=pl.GridSpec(
            grid=grid,
            in_specs=[
                pl.BlockSpec(memory_space=pltpu.MemorySpace.SMEM),  # `a`
                pl.BlockSpec((tr, lane), lambda i: (i, 0)),          # x tiles
            ],
            out_specs=pl.BlockSpec((tr, lane), lambda i: (i, 0)),
        ),
        compiler_params=pltpu.CompilerParams(
            dimension_semantics=("parallel",),
            vmem_limit_bytes=32 * _MIB,  # safe on v5e/v6e (128 MiB) and v7x (64 MiB)
        ),
    )(a_arr, x2)


def sub_const(x, a=0):
    """Elementwise x + a (matches SubConst.forward), computed in Pallas."""
    orig_shape = x.shape
    dtype = x.dtype
    n = x.size
    num_tc, block_bytes = _tpu_config()

    # Constant as a 32-bit scalar SMEM operand, dtype-family matched.
    if jnp.issubdtype(dtype, jnp.floating):
        a_arr = jnp.asarray([a], dtype=jnp.float32)
    else:
        a_arr = jnp.asarray([a], dtype=jnp.int32)

    if n == 0:
        return x + jnp.asarray(a, dtype=dtype)

    flat = x.reshape(-1)

    # Lane-dense flat layout: largest lane width in 128..1024 that divides n.
    lane = None
    for c in (1024, 512, 256, 128):
        if n % c == 0:
            lane = c
            break

    if lane is not None:
        out2 = _add_const_2d(flat.reshape(n // lane, lane), a_arr, dtype,
                             num_tc, block_bytes)
        return out2.reshape(orig_shape)

    # Ragged case (n % 128 != 0): kernel on the 128-aligned bulk, plain XLA on
    # the <128-element tail (avoids the pad + slice full-array HBM copies).
    lane = 128
    n_bulk = (n // lane) * lane
    if n_bulk == 0:
        # TODO(synk): tiny (<128 element) inputs — plain XLA add only.
        return (flat + jnp.asarray(a, dtype=dtype)).reshape(orig_shape)
    bulk_out = _add_const_2d(flat[:n_bulk].reshape(n_bulk // lane, lane),
                             a_arr, dtype, num_tc, block_bytes).reshape(-1)
    tail_out = flat[n_bulk:] + jnp.asarray(a, dtype=dtype)
    return jnp.concatenate([bulk_out, tail_out]).reshape(orig_shape)


if __name__ == "__main__":
    key = jax.random.PRNGKey(0)
    # Shapes consistent with a generic NCHW input: batch=2, channels=4, 16x16.
    x = jax.random.normal(key, (2, 4, 16, 16), dtype=jnp.float32)
    a = 3  # module default is a=0; nonzero constant exercises the add

    y = sub_const(x, a=a)
    y = jax.block_until_ready(y)

    # Reference check in plain JAX (module computes x + a).
    ref = x + a
    assert y.shape == ref.shape and y.dtype == ref.dtype
    assert jnp.allclose(y, ref), "mismatch vs reference"
    print("KERNEL_OK")
</pallas_src>

<mosaic_0001>
module attributes {stable_mosaic.version = 11 : i64} {
  func.func @_add_const_kernel(%arg0: i32, %arg1: memref<1xf32, #tpu.memory_space<smem>>, %arg2: memref<2x1024xf32, #tpu.memory_space<vmem>>, %arg3: memref<2x1024xf32, #tpu.memory_space<vmem>>) attributes {dimension_semantics = [#tpu.dimension_semantics<parallel>], iteration_bounds = array<i64: 1>, scalar_prefetch = 0 : i64, scratch_operands = 0 : i64, tpu.core_type = #tpu.core_type<tc>, window_params = [{transform_indices = @transform_0, window_bounds = array<i64: 1>}, {transform_indices = @transform_1, window_bounds = array<i64: 2, 1024>}, {transform_indices = @transform_2, window_bounds = array<i64: 2, 1024>}]} {
    %c0 = arith.constant 0 : index
    %c0_0 = arith.constant 0 : index
    %0 = vector.load %arg2[%c0, %c0_0] : memref<2x1024xf32, #tpu.memory_space<vmem>>, vector<2x1024xf32>
    %c0_1 = arith.constant 0 : index
    %1 = memref.load %arg1[%c0_1] : memref<1xf32, #tpu.memory_space<smem>>
    %2 = vector.broadcast %1 : f32 to vector<2x1024xf32>
    %3 = arith.addf %0, %2 : vector<2x1024xf32>
    %c0_2 = arith.constant 0 : index
    %c0_3 = arith.constant 0 : index
    %4 = vector.load %arg3[%c0_2, %c0_3] : memref<2x1024xf32, #tpu.memory_space<vmem>>, vector<2x1024xf32>
    tpu.vector_store %arg3[%c0_2, %c0_3], %3 {strides = array<i32>} : memref<2x1024xf32, #tpu.memory_space<vmem>>, vector<2x1024xf32>,
    return
  }
  func.func @transform_0(%arg0: i32) -> i32 {
    %c0_i32 = arith.constant 0 : i32
    %c0_i32_0 = arith.constant 0 : i32
    return %c0_i32 : i32
  }
  func.func @transform_1(%arg0: i32) -> (i32, i32) {
    %c0_i32 = arith.constant 0 : i32
    %c0_i32_0 = arith.constant 0 : i32
    return %arg0, %c0_i32 : i32, i32
  }
  func.func @transform_2(%arg0: i32) -> (i32, i32) {
    %c0_i32 = arith.constant 0 : i32
    %c0_i32_0 = arith.constant 0 : i32
    return %arg0, %c0_i32 : i32, i32
  }
}

</mosaic_0001>

<bundles_post_ra>
// kernel: tpu_custom_call.1
= control target key start
LH: loop header
LB: loop body
LE: loop exit
PB: predicated region body
PF: predicated region fallthrough
CT: control target
= control target key end

     0   :  { %8 = vsyncpa [#allocation4], 0  ;;  %s120_s0 = inlined_call_operand.<no memory space> [shape: f32[1], index: 0, kind: input, shape index: {}]   ;;  %s121_s1 = inlined_call_operand.hbm [shape: f32[2,1024], index: 1, kind: input, shape index: {}]   ;;  %s122_s2 = inlined_call_operand.hbm [shape: f32[2,1024], index: 2, kind: output, shape index: {}]  }
   0x1   :  { %9 = vsyncpa [#allocation5], 0  ;;  %s94_s9 = smov [#allocation3]  }
   0x2   :  { %s18_s10 = sshll.u32 %s94_s9, 4  ;;  %s19_s10 = int_to_ptr.vmem [resolvable:$true] %s18_s10 }
   0x3   :  { %s58_s11 = scalar_lea.vmem %s19_s10, 256  ;;  %p63_p1 = scmp.lt.s32.totalorder %s19_s10, %s19_s10 }
   0x4   :  { %p59_p0 = scmp.ne.s32.totalorder %s19_s10, %s58_s11  ;;  %p64_p2 = scmp.lt.s32.totalorder %s58_s11, %s58_s11 }
   0x6   :  { %p65_p3 = por %p64_p2, %p63_p1 }
   0x8   :  { %p66_p4 = pnand %p65_p3, %p59_p0 }
   0xa   :  { %69 = shalt.err (!%p66_p4)
}
   0xb   :  { %21 = dma.hbm_to_vmem [thread:$0]  %s121_s1, 256, %s19_s10, [#allocation4]  }
   0xc   :  { %90 = dma.done.wait [#allocation4], 256  }
   0xd   :  { %91 = vsyncadd [#allocation4], 4294967040  ;;  %v28_v0 = vstv %s120_s0  ;;  %s95_s16 = smov [#allocation6]   ;;  %v25_v1 = vld [vmem:[#allocation3] sm:$0xff]  ;;  %v26_v2 = vld [vmem:[#allocation3 + $0x8] sm:$0xff] }
   0xe   :  { %s39_s17 = sshll.u32 %s95_s16, 4  ;;  %v29_v3 = vadd.f32 %v28_v0, %v25_v1  ;;  %v30_v4 = vadd.f32 %v28_v0, %v26_v2  ;;  %s40_s17 = int_to_ptr.vmem [resolvable:$true] %s39_s17 }
   0xf   :  { %s70_s18 = scalar_lea.vmem %s40_s17, 256  ;;  %p75_p6 = scmp.lt.s32.totalorder %s40_s17, %s40_s17 }
  0x10   :  { %31 = vst [vmem:[#allocation6] sm:$0xff] %v29_v3  ;;  %32 = vst [vmem:[#allocation6 + $0x8] sm:$0xff] %v30_v4  ;;  %p71_p5 = scmp.ne.s32.totalorder %s40_s17, %s70_s18  ;;  %p76_p7 = scmp.lt.s32.totalorder %s70_s18, %s70_s18 }
  0x12   :  { %p77_p8 = por %p76_p7, %p75_p6 }
  0x14   :  { %p78_p9 = pnand %p77_p8, %p71_p5 }
  0x16   :  { %81 = shalt.err (!%p78_p9)
}
  0x17   :  { %42 = dma.vmem_to_hbm [thread:$0]  %s40_s17, 256, %s122_s2, [#allocation5]  }
  0x18   :  { %92 = dma.done.wait [#allocation5], 256  }
  0x19   :  { %93 = vsyncadd [#allocation5], 4294967040 }
  0x1a   :  { %46 = vsyncpa [#allocation4], 1 }
  0x1b   :  { %47 = vsyncpa [#allocation5], 1 }

</bundles_post_ra>
